<compile_context>
chip_gen: v7x
topology: tpu7x:2x2x1
jax: 0.10.0
libtpu: 0.0.40
codegen_flags: <defaults>
</compile_context>

<pallas_src>
import jax
import jax.numpy as jnp
from jax import lax
from jax.experimental import pallas as pl
from jax.experimental.pallas import tpu as pltpu


_NEG_BIG = -1e30  # finite "minus infinity" (avoids -inf/NaN arithmetic)


def _round_up(x: int, m: int) -> int:
    return ((x + m - 1) // m) * m


def _tpu_vmem_capacity_bytes() -> int:
    try:
        return int(pltpu.get_tpu_info().vmem_capacity_bytes)
    except Exception:
        return 64 * 1024 * 1024  # conservative default (v7x physical VMEM)


def _is_v5() -> bool:
    try:
        return "v5" in jax.devices()[0].device_kind.lower()
    except Exception:
        return False


def _vmem_estimate(tile_i: int, tile_j: int, f_pad: int) -> int:
    """Rough VMEM footprint for one grid step (double-buffered inputs)."""
    est = (2 * tile_i * f_pad * 2          # p row tile, bf16, double-buffered
           + 2 * tile_j * f_pad * 2        # z column tile, bf16, double-buffered
           + 2 * tile_j * 4                # bias block
           + 2 * 8 * 128 * 4               # output block
           + 3 * tile_i * 4                # m / l / diag scratch
           + 4 * tile_i * tile_j * 4)      # logits / exp / select intermediates
    return int(est * 1.25)                 # headroom


def _pick_tiles(n: int, f_pad: int, usable_vmem: int, prefer_tile_j: int):
    n_rows8 = _round_up(n, 8)
    n_128 = _round_up(n, 128)

    # Resident-z configuration: whole z as a single column tile (read once).
    resident_ok = (2 * n_128 * f_pad * 2 <= 24 * 1024 * 1024 and
                   _vmem_estimate(min(512, n_rows8), n_128, f_pad) <= usable_vmem // 2)
    if resident_ok:
        tile_j = n_128
    else:
        tile_j = min(prefer_tile_j, n_128)

    # Largest p row tile that fits the VMEM budget (amortizes the z stream).
    candidates = ((n_rows8,) if n_rows8 <= 1024 else tuple()) + \
                 (1024, 512, 256, 128, 64, 32, 16, 8)
    tile_i = 8
    for cand in candidates:
        if cand > n_rows8:
            continue
        if _vmem_estimate(cand, tile_j, f_pad) <= usable_vmem:
            tile_i = cand
            break
    return tile_i, tile_j


def _make_kernel(inv_t: float, tile_i: int, tile_j: int, n_valid: int):
    def kernel(p_ref, z_ref, bias_ref, out_ref, m_sc, l_sc, d_sc):
        i = pl.program_id(0)     # p row tile        ("parallel")
        j = pl.program_id(1)     # z row/column tile ("arbitrary")

        @pl.when(j == 0)
        def _init():
            m_sc[...] = jnp.full_like(m_sc, _NEG_BIG)
            l_sc[...] = jnp.zeros_like(l_sc)
            d_sc[...] = jnp.zeros_like(d_sc)

        # MXU: bf16 operands, contraction over the last dim of BOTH operands
        # (no transpose), f32 accumulation.
        s = lax.dot_general(
            p_ref[...], z_ref[...],
            dimension_numbers=(((1,), (1,)), ((), ())),
            preferred_element_type=jnp.float32)
        s = s * inv_t + bias_ref[...]       # additive -1e30 bias masks padded cols

        row0 = i * tile_i
        col0 = j * tile_j

        # Diagonal of the logits, taken from the same bf16-MXU values as the
        # logsumexp; only runs on the tiles that intersect the diagonal.
        intersects = jnp.logical_and(col0 < row0 + tile_i, col0 + tile_j > row0)

        @pl.when(intersects)
        def _diag():
            rows = row0 + lax.broadcasted_iota(jnp.int32, (tile_i, tile_j), 0)
            cols = col0 + lax.broadcasted_iota(jnp.int32, (tile_i, tile_j), 1)
            d_sc[...] += jnp.sum(jnp.where(rows == cols, s, 0.0),
                                 axis=1, keepdims=True)

        # Online (flash-style) logsumexp across column tiles.
        m_prev = m_sc[...]
        m_new = jnp.maximum(m_prev, jnp.max(s, axis=1, keepdims=True))
        alpha = jnp.exp(m_prev - m_new)
        l_sc[...] = alpha * l_sc[...] + jnp.sum(jnp.exp(s - m_new),
                                                axis=1, keepdims=True)
        m_sc[...] = m_new

        @pl.when(j == pl.num_programs(1) - 1)
        def _finalize():
            lse = m_sc[...] + jnp.log(l_sc[...])
            loss_col = lse - d_sc[...]                        # (tile_i, 1), >= 0
            rows = row0 + lax.broadcasted_iota(jnp.int32, loss_col.shape, 0)
            partial = jnp.sum(jnp.where(rows < n_valid, loss_col, 0.0))
            out_ref[...] = jnp.broadcast_to(partial, out_ref.shape)

    return kernel


def contrastive_distill_loss(p1, p2, z1, z2, temperature: float = 0.2, *,
                             tiles=None):
    """JAX/Pallas equivalent of ContrastiveDistillLoss.forward."""
    # Glue (concat / normalize / pad) stays in plain JAX.
    p = jnp.concatenate([p1, p2], axis=0).astype(jnp.float32)   # (2b, f)
    z = jnp.concatenate([z1, z2], axis=0).astype(jnp.float32)   # (2b, f)
    n, f = p.shape

    # F.normalize semantics (eps=1e-12) in f32, then feed bf16 to the MXU.
    p = p / jnp.maximum(jnp.linalg.norm(p, axis=-1, keepdims=True), 1e-12)
    z = z / jnp.maximum(jnp.linalg.norm(z, axis=-1, keepdims=True), 1e-12)
    p = p.astype(jnp.bfloat16)
    z = z.astype(jnp.bfloat16)

    f_pad = _round_up(f, 128)
    cap = _tpu_vmem_capacity_bytes()
    usable = min(int(cap * 0.7), 96 * 1024 * 1024)   # ~45 MiB on v7x, 90 MiB v5e/v6e
    prefer_tile_j = 128 if _is_v5() else 256
    if tiles is None:
        tile_i, tile_j = _pick_tiles(n, f_pad, usable, prefer_tile_j)
    else:
        tile_i, tile_j = tiles

    num_i = -(-n // tile_i)
    num_j = -(-n // tile_j)
    n_rows_pad = num_i * tile_i
    n_cols_pad = num_j * tile_j

    p_pad = jnp.pad(p, ((0, n_rows_pad - n), (0, f_pad - f)))
    z_pad = jnp.pad(z, ((0, n_cols_pad - n), (0, f_pad - f)))
    bias = jnp.where(jnp.arange(n_cols_pad) < n, 0.0, _NEG_BIG)
    bias = bias.astype(jnp.float32)[None, :]                     # (1, n_cols_pad)

    kernel = _make_kernel(1.0 / float(temperature), tile_i, tile_j, n)

    est = _vmem_estimate(tile_i, tile_j, f_pad)
    vmem_limit = int(min(max(2 * est, 32 * 1024 * 1024), usable))

    out = pl.pallas_call(
        kernel,
        out_shape=jax.ShapeDtypeStruct((num_i, 8, 128), jnp.float32),
        grid_spec=pltpu.PrefetchScalarGridSpec(
            num_scalar_prefetch=0,
            grid=(num_i, num_j),
            in_specs=[
                pl.BlockSpec((tile_i, f_pad), lambda i, j: (i, 0)),   # p row tile
                pl.BlockSpec((tile_j, f_pad), lambda i, j: (j, 0)),   # z col tile
                pl.BlockSpec((1, tile_j), lambda i, j: (0, j)),       # column bias
            ],
            out_specs=pl.BlockSpec((1, 8, 128), lambda i, j: (i, 0, 0)),
            scratch_shapes=[
                pltpu.VMEM((tile_i, 1), jnp.float32),   # m (running max)
                pltpu.VMEM((tile_i, 1), jnp.float32),   # l (running sum of exp)
                pltpu.VMEM((tile_i, 1), jnp.float32),   # diag accumulator
            ],
        ),
        compiler_params=pltpu.CompilerParams(
            dimension_semantics=("parallel", "arbitrary"),
            vmem_limit_bytes=vmem_limit,
        ),
    )(p_pad, z_pad, bias)

    # Per-tile partial sums of (lse - diag) over valid rows; final mean here.
    return jnp.sum(out[:, 0, 0]) / n


def _reference_loss(p1, p2, z1, z2, temperature=0.2):
    """Pure-JAX f32 reference mirroring the PyTorch forward."""
    p = jnp.concatenate([p1, p2], axis=0).astype(jnp.float32)
    z = jnp.concatenate([z1, z2], axis=0).astype(jnp.float32)
    p = p / jnp.maximum(jnp.linalg.norm(p, axis=-1, keepdims=True), 1e-12)
    z = z / jnp.maximum(jnp.linalg.norm(z, axis=-1, keepdims=True), 1e-12)
    logits = (p @ z.T) / temperature
    logits = logits - jnp.max(logits, axis=1, keepdims=True)
    log_prob = logits - jnp.log(jnp.sum(jnp.exp(logits), axis=1, keepdims=True))
    return -jnp.mean(jnp.diagonal(log_prob))


if __name__ == "__main__":
    key = jax.random.PRNGKey(0)
    k1, k2, k3, k4 = jax.random.split(key, 4)

    # Small case (batch=8, hidden=32): resident-z single-column-tile config.
    b, f = 8, 32
    p1 = jax.random.normal(k1, (b, f), dtype=jnp.float32)
    p2 = jax.random.normal(k2, (b, f), dtype=jnp.float32)
    z1 = jax.random.normal(k3, (b, f), dtype=jnp.float32)
    z2 = jax.random.normal(k4, (b, f), dtype=jnp.float32)
    loss = contrastive_distill_loss(p1, p2, z1, z2, temperature=0.2)
    jax.block_until_ready(loss)
    ref = _reference_loss(p1, p2, z1, z2, temperature=0.2)
    # bf16 MXU operands -> loosen tolerance vs the f32 reference.
    assert jnp.allclose(loss, ref, atol=5e-2, rtol=5e-2), (loss, ref)

    # Second case with forced asymmetric tiles: exercises the multi-column-tile
    # online-logsumexp path with row *and* column padding.
    b2, f2 = 100, 48
    q1 = jax.random.normal(k1, (b2, f2), dtype=jnp.float32)
    q2 = jax.random.normal(k2, (b2, f2), dtype=jnp.float32)
    y1 = jax.random.normal(k3, (b2, f2), dtype=jnp.float32)
    y2 = jax.random.normal(k4, (b2, f2), dtype=jnp.float32)
    loss2 = contrastive_distill_loss(q1, q2, y1, y2, temperature=0.2,
                                     tiles=(64, 128))
    jax.block_until_ready(loss2)
    ref2 = _reference_loss(q1, q2, y1, y2, temperature=0.2)
    assert jnp.allclose(loss2, ref2, atol=5e-2, rtol=5e-2), (loss2, ref2)

    print("KERNEL_OK")
</pallas_src>

<mosaic_0001>
module attributes {stable_mosaic.version = 11 : i64} {
  func.func @kernel(%arg0: i32, %arg1: i32, %arg2: memref<16x128xbf16, #tpu.memory_space<vmem>>, %arg3: memref<128x128xbf16, #tpu.memory_space<vmem>>, %arg4: memref<1x128xf32, #tpu.memory_space<vmem>>, %arg5: memref<1x8x128xf32, #tpu.memory_space<vmem>>, %arg6: memref<16x1xf32, #tpu.memory_space<vmem>>, %arg7: memref<16x1xf32, #tpu.memory_space<vmem>>, %arg8: memref<16x1xf32, #tpu.memory_space<vmem>>) attributes {dimension_semantics = [#tpu.dimension_semantics<parallel>, #tpu.dimension_semantics<arbitrary>], iteration_bounds = array<i64: 1, 1>, scalar_prefetch = 0 : i64, scratch_operands = 3 : i64, tpu.core_type = #tpu.core_type<tc>, window_params = [{transform_indices = @transform_0, window_bounds = array<i64: 16, 128>}, {transform_indices = @transform_1, window_bounds = array<i64: 128, 128>}, {transform_indices = @transform_2, window_bounds = array<i64: 1, 128>}, {transform_indices = @transform_3, window_bounds = array<i64: 1, 8, 128>}]} {
    %c0_i32 = arith.constant 0 : i32
    %0 = arith.cmpi eq, %arg1, %c0_i32 : i32
    %1 = arith.extui %0 : i1 to i32
    %c0_i32_0 = arith.constant 0 : i32
    %2 = arith.cmpi ne, %1, %c0_i32_0 : i32
    scf.if %2 {
      %cst_22 = arith.constant -1.000000e+30 : f32
      %39 = vector.broadcast %cst_22 : f32 to vector<16x1xf32>
      %c0_23 = arith.constant 0 : index
      %c0_24 = arith.constant 0 : index
      %40 = vector.load %arg6[%c0_23, %c0_24] : memref<16x1xf32, #tpu.memory_space<vmem>>, vector<16x1xf32>
      tpu.vector_store %arg6[%c0_23, %c0_24], %39 {strides = array<i32>} : memref<16x1xf32, #tpu.memory_space<vmem>>, vector<16x1xf32>,
      %cst_25 = arith.constant 0.000000e+00 : f32
      %41 = vector.broadcast %cst_25 : f32 to vector<16x1xf32>
      %c0_26 = arith.constant 0 : index
      %c0_27 = arith.constant 0 : index
      %42 = vector.load %arg7[%c0_26, %c0_27] : memref<16x1xf32, #tpu.memory_space<vmem>>, vector<16x1xf32>
      tpu.vector_store %arg7[%c0_26, %c0_27], %41 {strides = array<i32>} : memref<16x1xf32, #tpu.memory_space<vmem>>, vector<16x1xf32>,
      %cst_28 = arith.constant 0.000000e+00 : f32
      %43 = vector.broadcast %cst_28 : f32 to vector<16x1xf32>
      %c0_29 = arith.constant 0 : index
      %c0_30 = arith.constant 0 : index
      %44 = vector.load %arg8[%c0_29, %c0_30] : memref<16x1xf32, #tpu.memory_space<vmem>>, vector<16x1xf32>
      tpu.vector_store %arg8[%c0_29, %c0_30], %43 {strides = array<i32>} : memref<16x1xf32, #tpu.memory_space<vmem>>, vector<16x1xf32>,
    } else {
    }
    %c0 = arith.constant 0 : index
    %c0_1 = arith.constant 0 : index
    %3 = vector.load %arg2[%c0, %c0_1] : memref<16x128xbf16, #tpu.memory_space<vmem>>, vector<16x128xbf16>
    %c0_2 = arith.constant 0 : index
    %c0_3 = arith.constant 0 : index
    %4 = vector.load %arg3[%c0_2, %c0_3] : memref<128x128xbf16, #tpu.memory_space<vmem>>, vector<128x128xbf16>
    %cst = arith.constant dense<0.000000e+00> : vector<16x128xf32>
    %5 = tpu.matmul %3, %4, %cst {dimension_numbers = #tpu.dot_dimension_numbers<[1], [1], [0], [0], [0, 0, 1, 0], [], []>} : vector<16x128xbf16>, vector<128x128xbf16>, vector<16x128xf32> -> vector<16x128xf32>
    %cst_4 = arith.constant 5.000000e+00 : f32
    %6 = vector.broadcast %cst_4 : f32 to vector<16x128xf32>
    %7 = arith.mulf %5, %6 : vector<16x128xf32>
    %c0_5 = arith.constant 0 : index
    %c0_6 = arith.constant 0 : index
    %8 = vector.load %arg4[%c0_5, %c0_6] : memref<1x128xf32, #tpu.memory_space<vmem>>, vector<1x128xf32>
    %9 = vector.broadcast %8 : vector<1x128xf32> to vector<16x128xf32>
    %10 = arith.addf %7, %9 : vector<16x128xf32>
    %c16_i32 = arith.constant 16 : i32
    %11 = arith.muli %arg0, %c16_i32 : i32
    %c128_i32 = arith.constant 128 : i32
    %12 = arith.muli %arg1, %c128_i32 : i32
    %c16_i32_7 = arith.constant 16 : i32
    %13 = arith.addi %11, %c16_i32_7 : i32
    %14 = arith.cmpi slt, %12, %13 : i32
    %c128_i32_8 = arith.constant 128 : i32
    %15 = arith.addi %12, %c128_i32_8 : i32
    %16 = arith.cmpi sgt, %15, %11 : i32
    %17 = arith.andi %14, %16 : i1
    %18 = arith.extui %17 : i1 to i32
    %c0_i32_9 = arith.constant 0 : i32
    %19 = arith.cmpi ne, %18, %c0_i32_9 : i32
    scf.if %19 {
      %39 = tpu.iota {dimensions = array<i32: 0>} : vector<16x128xi32>
      %40 = vector.broadcast %11 : i32 to vector<16x128xi32>
      %41 = arith.addi %40, %39 : vector<16x128xi32>
      %42 = tpu.iota {dimensions = array<i32: 1>} : vector<16x128xi32>
      %43 = vector.broadcast %12 : i32 to vector<16x128xi32>
      %44 = arith.addi %43, %42 : vector<16x128xi32>
      %c0_22 = arith.constant 0 : index
      %c0_23 = arith.constant 0 : index
      %45 = vector.load %arg8[%c0_22, %c0_23] : memref<16x1xf32, #tpu.memory_space<vmem>>, vector<16x1xf32>
      %46 = arith.cmpi eq, %41, %44 : vector<16x128xi32>
      %cst_24 = arith.constant 0.000000e+00 : f32
      %47 = vector.broadcast %cst_24 : f32 to vector<16x128xf32>
      %48 = arith.select %46, %10, %47 : vector<16x128xi1>, vector<16x128xf32>
      %cst_25 = arith.constant dense<0.000000e+00> : vector<16xf32>
      %49 = vector.multi_reduction <add>, %48, %cst_25 [1] : vector<16x128xf32> to vector<16xf32>
      %50 = vector.shape_cast %49 : vector<16xf32> to vector<16x1xf32>
      %51 = arith.addf %45, %50 : vector<16x1xf32>
      %c0_26 = arith.constant 0 : index
      %c0_27 = arith.constant 0 : index
      %52 = vector.load %arg8[%c0_26, %c0_27] : memref<16x1xf32, #tpu.memory_space<vmem>>, vector<16x1xf32>
      tpu.vector_store %arg8[%c0_26, %c0_27], %51 {strides = array<i32>} : memref<16x1xf32, #tpu.memory_space<vmem>>, vector<16x1xf32>,
    } else {
    }
    %c0_10 = arith.constant 0 : index
    %c0_11 = arith.constant 0 : index
    %20 = vector.load %arg6[%c0_10, %c0_11] : memref<16x1xf32, #tpu.memory_space<vmem>>, vector<16x1xf32>
    %cst_12 = arith.constant dense<0xFF800000> : vector<16xf32>
    %21 = vector.multi_reduction <maximumf>, %10, %cst_12 [1] : vector<16x128xf32> to vector<16xf32>
    %22 = vector.shape_cast %21 : vector<16xf32> to vector<16x1xf32>
    %23 = arith.maximumf %20, %22 : vector<16x1xf32>
    %24 = arith.subf %20, %23 : vector<16x1xf32>
    %25 = math.exp %24 : vector<16x1xf32>
    %c0_13 = arith.constant 0 : index
    %c0_14 = arith.constant 0 : index
    %26 = vector.load %arg7[%c0_13, %c0_14] : memref<16x1xf32, #tpu.memory_space<vmem>>, vector<16x1xf32>
    %27 = arith.mulf %25, %26 : vector<16x1xf32>
    %28 = vector.broadcast %23 : vector<16x1xf32> to vector<16x128xf32>
    %29 = arith.subf %10, %28 : vector<16x128xf32>
    %30 = math.exp %29 : vector<16x128xf32>
    %cst_15 = arith.constant dense<0.000000e+00> : vector<16xf32>
    %31 = vector.multi_reduction <add>, %30, %cst_15 [1] : vector<16x128xf32> to vector<16xf32>
    %32 = vector.shape_cast %31 : vector<16xf32> to vector<16x1xf32>
    %33 = arith.addf %27, %32 : vector<16x1xf32>
    %c0_16 = arith.constant 0 : index
    %c0_17 = arith.constant 0 : index
    %34 = vector.load %arg7[%c0_16, %c0_17] : memref<16x1xf32, #tpu.memory_space<vmem>>, vector<16x1xf32>
    tpu.vector_store %arg7[%c0_16, %c0_17], %33 {strides = array<i32>} : memref<16x1xf32, #tpu.memory_space<vmem>>, vector<16x1xf32>,
    %c0_18 = arith.constant 0 : index
    %c0_19 = arith.constant 0 : index
    %35 = vector.load %arg6[%c0_18, %c0_19] : memref<16x1xf32, #tpu.memory_space<vmem>>, vector<16x1xf32>
    tpu.vector_store %arg6[%c0_18, %c0_19], %23 {strides = array<i32>} : memref<16x1xf32, #tpu.memory_space<vmem>>, vector<16x1xf32>,
    %c0_i32_20 = arith.constant 0 : i32
    %36 = arith.cmpi eq, %arg1, %c0_i32_20 : i32
    %37 = arith.extui %36 : i1 to i32
    %c0_i32_21 = arith.constant 0 : i32
    %38 = arith.cmpi ne, %37, %c0_i32_21 : i32
    scf.if %38 {
      %c0_22 = arith.constant 0 : index
      %c0_23 = arith.constant 0 : index
      %39 = vector.load %arg6[%c0_22, %c0_23] : memref<16x1xf32, #tpu.memory_space<vmem>>, vector<16x1xf32>
      %c0_24 = arith.constant 0 : index
      %c0_25 = arith.constant 0 : index
      %40 = vector.load %arg7[%c0_24, %c0_25] : memref<16x1xf32, #tpu.memory_space<vmem>>, vector<16x1xf32>
      %41 = math.log %40 : vector<16x1xf32>
      %42 = arith.addf %39, %41 : vector<16x1xf32>
      %c0_26 = arith.constant 0 : index
      %c0_27 = arith.constant 0 : index
      %43 = vector.load %arg8[%c0_26, %c0_27] : memref<16x1xf32, #tpu.memory_space<vmem>>, vector<16x1xf32>
      %44 = arith.subf %42, %43 : vector<16x1xf32>
      %45 = tpu.iota {dimensions = array<i32: 0>} : vector<16x1xi32>
      %46 = vector.broadcast %11 : i32 to vector<16x1xi32>
      %47 = arith.addi %46, %45 : vector<16x1xi32>
      %c16_i32_28 = arith.constant 16 : i32
      %48 = vector.broadcast %c16_i32_28 : i32 to vector<16x1xi32>
      %49 = arith.cmpi slt, %47, %48 : vector<16x1xi32>
      %cst_29 = arith.constant 0.000000e+00 : f32
      %50 = vector.broadcast %cst_29 : f32 to vector<16x1xf32>
      %51 = arith.select %49, %44, %50 : vector<16x1xi1>, vector<16x1xf32>
      %52 = vector.shape_cast %51 : vector<16x1xf32> to vector<1x16x1xf32>
      %cst_30 = arith.constant dense<0.000000e+00> : vector<1xf32>
      %53 = vector.multi_reduction <add>, %52, %cst_30 [1, 2] : vector<1x16x1xf32> to vector<1xf32>
      %54 = vector.shape_cast %53 : vector<1xf32> to vector<1x1x1xf32>
      %55 = vector.extract %54[0, 0, 0] : f32 from vector<1x1x1xf32>
      %56 = vector.broadcast %55 : f32 to vector<1x8x128xf32>
      %c0_31 = arith.constant 0 : index
      %c0_32 = arith.constant 0 : index
      %c0_33 = arith.constant 0 : index
      %57 = vector.load %arg5[%c0_31, %c0_32, %c0_33] : memref<1x8x128xf32, #tpu.memory_space<vmem>>, vector<1x8x128xf32>
      tpu.vector_store %arg5[%c0_31, %c0_32, %c0_33], %56 {strides = array<i32>} : memref<1x8x128xf32, #tpu.memory_space<vmem>>, vector<1x8x128xf32>,
    } else {
    }
    return
  }
  func.func @transform_0(%arg0: i32, %arg1: i32) -> (i32, i32) {
    %c0_i32 = arith.constant 0 : i32
    %c0_i32_0 = arith.constant 0 : i32
    return %arg0, %c0_i32 : i32, i32
  }
  func.func @transform_1(%arg0: i32, %arg1: i32) -> (i32, i32) {
    %c0_i32 = arith.constant 0 : i32
    %c0_i32_0 = arith.constant 0 : i32
    return %arg1, %c0_i32 : i32, i32
  }
  func.func @transform_2(%arg0: i32, %arg1: i32) -> (i32, i32) {
    %c0_i32 = arith.constant 0 : i32
    %c0_i32_0 = arith.constant 0 : i32
    return %c0_i32, %arg1 : i32, i32
  }
  func.func @transform_3(%arg0: i32, %arg1: i32) -> (i32, i32, i32) {
    %c0_i32 = arith.constant 0 : i32
    %c0_i32_0 = arith.constant 0 : i32
    %c0_i32_1 = arith.constant 0 : i32
    return %arg0, %c0_i32, %c0_i32_0 : i32, i32, i32
  }
}

</mosaic_0001>

<bundles_post_ra>
// kernel: tpu_custom_call.1
= control target key start
LH: loop header
LB: loop body
LE: loop exit
PB: predicated region body
PF: predicated region fallthrough
CT: control target
= control target key end

     0   :  { %8 = vsyncpa [#allocation6], 0  ;;  %s543_s0 = inlined_call_operand.hbm [shape: bf16[16,128], index: 0, kind: input, shape index: {}]   ;;  %s544_s1 = inlined_call_operand.hbm [shape: bf16[128,128], index: 1, kind: input, shape index: {}]   ;;  %s545_s2 = inlined_call_operand.vmem [shape: f32[1,128], index: 2, kind: input, shape index: {}]   ;;  %s546_s3 = inlined_call_operand.hbm [shape: f32[1,8,128], index: 3, kind: output, shape index: {}]  }
   0x1   :  { %9 = vsyncpa [#allocation9], 0 }
   0x2   :  { %10 = vsyncpa [#allocation7], 0  ;;  %s461_s12 = smov [#allocation5]   ;;  %s389_s16 = scalar_lea.hbm %s543_s0, 128 }
   0x3   :  { %s16_s13 = sshll.u32 %s461_s12, 4  ;;  %p390_p0 = scmp.ne.s32.totalorder %s543_s0, %s389_s16  ;;  %s17_s13 = int_to_ptr.vmem [resolvable:$true] %s16_s13 }
   0x4   :  { %p393_p1 = scmp.lt.u32.totalorder %s389_s16, %s543_s0 }
   0x6   :  { %p395_p2 = pnand %p393_p1, %p390_p0 }
   0x8   :  { %398 = shalt.err (!%p395_p2)
}
   0x9   :  { %s399_s21 = scalar_lea.vmem %s17_s13, 128  ;;  %p404_p4 = scmp.lt.s32.totalorder %s17_s13, %s17_s13 }
   0xa   :  { %p400_p3 = scmp.ne.s32.totalorder %s17_s13, %s399_s21  ;;  %p405_p5 = scmp.lt.s32.totalorder %s399_s21, %s399_s21 }
   0xc   :  { %p406_p6 = por %p405_p5, %p404_p4 }
   0xe   :  { %p407_p7 = pnand %p406_p6, %p400_p3 }
  0x10   :  { %410 = shalt.err (!%p407_p7)
}
  0x11   :  { %s462_s22 = smov 64   ;;  %s463_s23 = smov 4  }
  0x12   :  { %22 = dma.hbm_to_vmem [thread:$0]  %s543_s0, 128, %s17_s13, [#allocation6], %s462_s22, %s462_s22, %s463_s23  }
  0x13   :  { %s464_s26 = smov [#allocation8]   ;;  %s411_s30 = scalar_lea.hbm %s544_s1, 1024 }
  0x14   :  { %s28_s27 = sshll.u32 %s464_s26, 4  ;;  %p412_p8 = scmp.ne.s32.totalorder %s544_s1, %s411_s30  ;;  %s29_s27 = int_to_ptr.vmem [resolvable:$true] %s28_s27 }
  0x15   :  { %p415_p9 = scmp.lt.u32.totalorder %s411_s30, %s544_s1 }
  0x17   :  { %p417_p10 = pnand %p415_p9, %p412_p8 }
  0x19   :  { %420 = shalt.err (!%p417_p10)
}
  0x1a   :  { %s421_s8 = scalar_lea.vmem %s29_s27, 1024  ;;  %p426_p12 = scmp.lt.s32.totalorder %s29_s27, %s29_s27 }
  0x1b   :  { %p422_p11 = scmp.ne.s32.totalorder %s29_s27, %s421_s8  ;;  %p427_p13 = scmp.lt.s32.totalorder %s421_s8, %s421_s8 }
  0x1d   :  { %p428_p0 = por %p427_p13, %p426_p12 }
  0x1f   :  { %p429_p1 = pnand %p428_p0, %p422_p11 }
  0x21   :  { %432 = shalt.err (!%p429_p1)
}
  0x22   :  { %34 = dma.hbm_to_vmem [thread:$0]  %s544_s1, 1024, %s29_s27, [#allocation9], %s462_s22, %s462_s22, %s463_s23  }
  0x23   :  { %455 = dma.done.wait [#allocation6], 128  }
  0x24   :  { %456 = vsyncadd [#allocation6], 4294967168 }
  0x25   :  { %457 = dma.done.wait [#allocation9], 1024  }
  0x26   :  { %458 = vsyncadd [#allocation9], 4294966272  ;;  %v465_v0 = vmov 0.0   ;;  %vm466_vm0 = vmmov 0   ;;  %v368_v1 = vld [vmem:[#allocation8] sm:$0xff]   ;;  %v369_v2 = vld [vmem:[#allocation8 + $0x8] sm:$0xff]   ;;  %v189_v35 = vlaneseq }
  0x27   :  { %335 = vmatprep.subr.bf16.mxu0 %v465_v0  ;;  %351 = vmatprep.mubr.msk.bf16.mxu0 %vm466_vm0, %v465_v0  ;;  %v370_v3 = vld [vmem:[#allocation8 + $0x10] sm:$0xff]   ;;  %v371_v4 = vld [vmem:[#allocation8 + $0x18] sm:$0xff]   ;;  %v372_v5 = vld [vmem:[#allocation8 + $0x20] sm:$0xff]   ;;  %vm48_vm1 = vcmask 7168   ;;  %v467_v10 = vmov -1e+30  }
  0x28   :  { %336 = vmatpush3.bf16.xpose.msra.mxu0 %v368_v1  ;;  %v373_v6 = vld [vmem:[#allocation8 + $0x28] sm:$0xff]   ;;  %v374_v7 = vld [vmem:[#allocation8 + $0x30] sm:$0xff]   ;;  %v375_v8 = vld [vmem:[#allocation8 + $0x38] sm:$0xff]   ;;  %49 = vst.msk [vmem:[#allocation2] sm:$0xff] %vm48_vm1, %v467_v10  ;;  %v468_v20 = vmov 0   ;;  %v190_v36 = vshrl.u32 %v189_v35, 7 }
  0x29   :  { %337 = vmatprep.subr.bf16.mxu0 %v465_v0  ;;  %v376_v9 = vld [vmem:[#allocation5] sm:$0xff]   ;;  %50 = vst.msk [vmem:[#allocation2 + $0x8] sm:$0xff] %vm48_vm1, %v467_v10  ;;  %51 = vst.msk [vmem:[#allocation3] sm:$0xff] %vm48_vm1, %v465_v0  ;;  %v325_v12 = vld [vmem:[%s545_s2] ss:$0 sm:$0xff]  ;;  %366 = vset.pattern.permute.xlu1 %v468_v20  ;;  %v196_v37 = vand.u32 127, %v189_v35 }
  0x2a   :  { %52 = vst.msk [vmem:[#allocation3 + $0x8] sm:$0xff] %vm48_vm1, %v465_v0  ;;  %53 = vst.msk [vmem:[#allocation4] sm:$0xff] %vm48_vm1, %v465_v0  ;;  %367 = vset.pattern.permute.xlu0 %v468_v20  ;;  %v191_v39 = vadd.s32 8, %v190_v36  ;;  %s469_s2 = smov [#allocation10]  }
  0x2b   :  { %54 = vst.msk [vmem:[#allocation4 + $0x8] sm:$0xff] %vm48_vm1, %v465_v0  ;;  %vm201_vm2 = vcmp.eq.s32.totalorder %v190_v36, %v196_v37  ;;  %s306_s11 = sshll.u32 %s469_s2, 4  ;;  %s307_s11 = int_to_ptr.vmem [resolvable:$true] %s306_s11 }
  0x2c   :  { %vm202_vm3 = vcmp.eq.s32.totalorder %v191_v39, %v196_v37  ;;  %s433_s13 = scalar_lea.vmem %s307_s11, 128  ;;  %p438_p3 = scmp.lt.s32.totalorder %s307_s11, %s307_s11 }
  0x2d   :  { %p434_p2 = scmp.ne.s32.totalorder %s307_s11, %s433_s13  ;;  %p439_p4 = scmp.lt.s32.totalorder %s433_s13, %s433_s13 }
  0x2f   :  { %v214_v21 = vld [vmem:[#allocation2] sm:$0xff]  ;;  %p440_p5 = por %p439_p4, %p438_p3 }
  0x30   :  { %338 = vmatpush3.bf16.xpose.msra.mxu0 %v369_v2  ;;  %v215_v24 = vld [vmem:[#allocation2 + $0x8] sm:$0xff]  ;;  %v228_v46 = vld [vmem:[#allocation3] sm:$0xff] }
  0x31   :  { %339 = vmatprep.subr.bf16.mxu0 %v465_v0  ;;  %v229_v50 = vld [vmem:[#allocation3 + $0x8] sm:$0xff]  ;;  %v199_v52 = vld [vmem:[#allocation4] sm:$0xff]  ;;  %p441_p6 = pnand %p440_p5, %p434_p2 }
  0x32   :  { %v200_v58 = vld [vmem:[#allocation4 + $0x8] sm:$0xff] }
  0x38   :  { %340 = vmatpush3.bf16.xpose.msra.mxu0 %v370_v3 }
  0x39   :  { %341 = vmatprep.subr.bf16.mxu0 %v465_v0 }
  0x40   :  { %342 = vmatpush3.bf16.xpose.msra.mxu0 %v371_v4 }
  0x41   :  { %343 = vmatprep.subr.bf16.mxu0 %v465_v0 }
  0x48   :  { %344 = vmatpush3.bf16.xpose.msra.mxu0 %v372_v5 }
  0x49   :  { %345 = vmatprep.subr.bf16.mxu0 %v465_v0 }
  0x50   :  { %346 = vmatpush3.bf16.xpose.msra.mxu0 %v373_v6 }
  0x51   :  { %347 = vmatprep.subr.bf16.mxu0 %v465_v0 }
  0x58   :  { %348 = vmatpush3.bf16.xpose.msra.mxu0 %v374_v7 }
  0x59   :  { %349 = vmatprep.subr.bf16.mxu0 %v465_v0 }
  0x60   :  { %350 = vmatpush3.bf16.xpose.msra.mxu0 %v375_v8 }
  0x67   :  { %352 = vmatmul.mubr.bf16.vlgmr.msra.gmra.mrb[0].mxu0 %v376_v9 }
 0x13a   :  { %v161_v11 = vpop.f32.mrb[0].mxu0 }
 0x13b   :  { %v168_v13 = vmul.f32 5.0, %v161_v11  ;;  %v353_v14 = vpop.f32.mrb[1].mxu0 }
 0x13c   :  { %v164_v15 = vpop.f32.mrb[2].mxu0 }
 0x13d   :  { %v177_v16 = vadd.f32 %v325_v12, %v168_v13  ;;  %v169_v17 = vmul.f32 5.0, %v164_v15  ;;  %v354_v18 = vpop.f32.mrb[3].mxu0 }
 0x13f   :  { %216 = vmax.xlane.f32.xlu0 %v177_v16  ;;  %v178_v19 = vadd.f32 %v325_v12, %v169_v17  ;;  %v203_v41 = vsel %vm201_vm2, %v177_v16, 0.0 }
 0x141   :  { %v204_v42 = vsel %vm202_vm3, %v178_v19, 0.0 }
 0x143   :  { %218 = vmax.xlane.f32.xlu0 %v178_v19 }
 0x1cc   :  { %v217_v22 = vpop.xlane.xlu0 %216 }
 0x1cd   :  { %v220_v23 = vmax.f32 %v214_v21, %v217_v22 }
 0x1cf   :  { %v222_v25 = vsub.f32 %v214_v21, %v220_v23  ;;  %257 = vst.msk [vmem:[#allocation2] sm:$0xff] %vm48_vm1, %v220_v23  ;;  %234 = vperm.xlu1 %366, %v220_v23  }
 0x1d0   :  { %v219_v26 = vpop.xlane.xlu0 %218 }
 0x1d1   :  { %v221_v27 = vmax.f32 %v215_v24, %v219_v26  ;;  %v224_v43 = vmul.f32 1.442695, %v222_v25 }
 0x1d3   :  { %v223_v28 = vsub.f32 %v215_v24, %v221_v27  ;;  %258 = vst.msk [vmem:[#allocation2 + $0x8] sm:$0xff] %vm48_vm1, %v221_v27  ;;  %239 = vperm.xlu1 %366, %v221_v27  }
 0x1d5   :  { %v226_v44 = vmul.f32 1.442695, %v223_v28 }
 0x1d6   :  { %v262_v1 = vld [vmem:[#allocation2] sm:$0xff] }
 0x1da   :  { %v263_v5 = vld [vmem:[#allocation2 + $0x8] sm:$0xff] }
 0x24e   :  { %v235_v29 = vpop.permute.xlu1 %234 }
 0x24f   :  { %v242_v30 = vsub.f32 %v177_v16, %v235_v29 }
 0x251   :  { %v244_v31 = vmul.f32 1.442695, %v242_v30 }
 0x252   :  { %v240_v32 = vpop.permute.xlu1 %239 }
 0x253   :  { %377 = vpow2.f32 %v244_v31  ;;  %v243_v33 = vsub.f32 %v178_v19, %v240_v32 }
 0x255   :  { %v246_v34 = vmul.f32 1.442695, %v243_v33 }
 0x257   :  { %379 = vpow2.f32 %v246_v34 }
 0x258   :  { %381 = vpow2.f32 %v224_v43 }
 0x259   :  { %383 = vpow2.f32 %v226_v44 }
 0x25d   :  { %v378_v38 = vpop.eup %377 }
 0x25e   :  { %248 = vadd.xlane.f32.xlu0 %v378_v38 }
 0x261   :  { %v380_v40 = vpop.eup %379 }
 0x262   :  { %205 = vadd.xlane.f32.xlu0 %v203_v41  ;;  %250 = vadd.xlane.f32.xlu1 %v380_v40  ;;  %v382_v45 = vpop.eup %381 }
 0x263   :  { %v230_v47 = vmul.f32 %v382_v45, %v228_v46  ;;  %v384_v48 = vpop.eup %383 }
 0x264   :  { %v231_v53 = vmul.f32 %v384_v48, %v229_v50 }
 0x266   :  { %207 = vadd.xlane.f32.xlu0 %v204_v42 }
 0x2eb   :  { %v249_v49 = vpop.xlane.xlu0 %248 }
 0x2ec   :  { %v252_v51 = vadd.f32 %v249_v49, %v230_v47 }
 0x2ee   :  { %255 = vst.msk [vmem:[#allocation3] sm:$0xff] %vm48_vm1, %v252_v51 }
 0x2ef   :  { %v206_v54 = vpop.xlane.xlu0 %205  ;;  %v251_v55 = vpop.xlane.xlu1 %250 }
 0x2f0   :  { %v209_v56 = vadd.f32 %v206_v54, %v199_v52  ;;  %v253_v57 = vadd.f32 %v251_v55, %v231_v53 }
 0x2f2   :  { %212 = vst.msk [vmem:[#allocation4] sm:$0xff] %vm48_vm1, %v209_v56  ;;  %256 = vst.msk [vmem:[#allocation3 + $0x8] sm:$0xff] %vm48_vm1, %v253_v57 }
 0x2f3   :  { %v208_v59 = vpop.xlane.xlu0 %207 }
 0x2f4   :  { %v210_v60 = vadd.f32 %v208_v59, %v200_v58 }
 0x2f5   :  { %v264_v61 = vld [vmem:[#allocation3] sm:$0xff] }
 0x2f6   :  { %213 = vst.msk [vmem:[#allocation4 + $0x8] sm:$0xff] %vm48_vm1, %v210_v60  ;;  %385 = vlog2.f32 %v264_v61 }
 0x2f9   :  { %v265_v62 = vld [vmem:[#allocation3 + $0x8] sm:$0xff]  ;;  %v272_v6 = vld [vmem:[#allocation4] sm:$0xff] }
 0x2fa   :  { %387 = vlog2.f32 %v265_v62 }
 0x2fd   :  { %v273_v9 = vld [vmem:[#allocation4 + $0x8] sm:$0xff] }
 0x300   :  { %v386_v63 = vpop.eup %385 }
 0x301   :  { %v267_v0 = vmul.f32 0.6931472, %v386_v63 }
 0x303   :  { %v270_v2 = vadd.f32 %v267_v0, %v262_v1 }
 0x304   :  { %v388_v3 = vpop.eup %387 }
 0x305   :  { %v269_v4 = vmul.f32 0.6931472, %v388_v3  ;;  %v274_v8 = vsub.f32 %v270_v2, %v272_v6 }
 0x307   :  { %v271_v7 = vadd.f32 %v269_v4, %v263_v5  ;;  %v286_v11 = vsel %vm48_vm1, %v274_v8, 0.0 }
 0x309   :  { %v275_v10 = vsub.f32 %v271_v7, %v273_v9 }
 0x30b   :  { %v287_v12 = vsel %vm48_vm1, %v275_v10, 0.0 }
 0x30c   :  { %v288_v13 = vadd.f32 %v287_v12, %v286_v11 }
 0x30e   :  { %289 = vadd.xlane.f32.xlu0 %v288_v13 }
 0x39b   :  { %v290_v14 = vpop.xlane.xlu0 %289 }
 0x39c   :  { %v291_v15 = vrot.slane %v290_v14, 4 }
 0x39e   :  { %v292_v16 = vadd.f32 %v291_v15, %v290_v14 }
 0x3a0   :  { %v293_v17 = vrot.slane %v292_v16, 2 }
 0x3a2   :  { %v294_v18 = vadd.f32 %v293_v17, %v292_v16 }
 0x3a4   :  { %v295_v19 = vrot.slane %v294_v18, 1 }
 0x3a6   :  { %v296_v20 = vadd.f32 %v295_v19, %v294_v18 }
 0x3a8   :  { %355 = vpush %v296_v20 }
 0x3d9   :  { %s356_s12 = spop %355 }
 0x3da   :  { %v298_v21 = vstv %s356_s12 }
 0x3db   :  { %299 = vst [vmem:[#allocation10] sm:$0xff] %v298_v21 }
 0x3dc   :  { %444 = shalt.err (!%p441_p6)
}
 0x3dd   :  { %s445_s16 = scalar_lea.hbm %s546_s3, 128 }
 0x3de   :  { %p446_p7 = scmp.ne.s32.totalorder %s546_s3, %s445_s16  ;;  %p449_p8 = scmp.lt.u32.totalorder %s445_s16, %s546_s3 }
 0x3e0   :  { %p451_p9 = pnand %p449_p8, %p446_p7 }
 0x3e2   :  { %454 = shalt.err (!%p451_p9)
}
 0x3e3   :  { %309 = dma.vmem_to_hbm [thread:$0]  %s307_s11, 128, %s546_s3, [#allocation7]  }
 0x3e4   :  { %459 = dma.done.wait [#allocation7], 128  }
 0x3e5   :  { %460 = vsyncadd [#allocation7], 4294967168 }
 0x3e6   :  { %313 = vsyncpa [#allocation6], 1 }
 0x3e7   :  { %314 = vsyncpa [#allocation9], 1 }
 0x3e8   :  { %315 = vsyncpa [#allocation7], 1 }

</bundles_post_ra>
